<compile_context>
chip_gen: v6e
topology: v6e:2x2x1
jax: 0.10.0
libtpu: 0.0.40
codegen_flags: <defaults>
</compile_context>

<pallas_src>
import functools

import jax
import jax.numpy as jnp
from jax.experimental import pallas as pl
from jax.experimental.pallas import tpu as pltpu


def _fused_mlp_kernel(*refs, num_layers):
    """Whole-MLP kernel: refs = (x, w0, b0, w1, b1, ..., w_last, b_last, out)."""
    x_ref = refs[0]
    o_ref = refs[-1]
    param_refs = refs[1:-1]

    h = x_ref[...]
    for i in range(num_layers):
        w_ref = param_refs[2 * i]
        b_ref = param_refs[2 * i + 1]
        # MXU matmul with f32 accumulation; bias broadcast (1, out) over rows.
        h = jnp.dot(h, w_ref[...], preferred_element_type=jnp.float32) + b_ref[...]
        if i < num_layers - 1:
            h = jnp.tanh(h)  # activation_function == torch.tanh (EUP)
    o_ref[...] = h.astype(o_ref.dtype)


def ann_net_forward(x, params):
    """Run the whole network in a single fused Pallas kernel."""
    num_layers = len(params)
    flat_params = []
    for w, b in params:
        flat_params.extend([w, b])

    batch = x.shape[0]
    out_dim = params[-1][0].shape[1]

    # Advisory cost estimate for XLA's scheduler.
    flops = sum(2 * batch * w.shape[0] * w.shape[1] for w, _ in params)
    transcendentals = sum(batch * w.shape[1] for w, _ in params[:-1])  # tanh
    bytes_accessed = (
        x.size * x.dtype.itemsize
        + sum(w.size * w.dtype.itemsize + b.size * b.dtype.itemsize for w, b in params)
        + batch * out_dim * x.dtype.itemsize
    )

    kernel = functools.partial(_fused_mlp_kernel, num_layers=num_layers)
    vmem_full = pl.BlockSpec(memory_space=pltpu.MemorySpace.VMEM)

    return pl.pallas_call(
        kernel,
        out_shape=jax.ShapeDtypeStruct((batch, out_dim), x.dtype),
        in_specs=[vmem_full] * (1 + 2 * num_layers),
        out_specs=vmem_full,
        compiler_params=pltpu.CompilerParams(
            vmem_limit_bytes=32 * 1024 * 1024,
        ),
        cost_estimate=pl.CostEstimate(
            flops=flops,
            transcendentals=transcendentals,
            bytes_accessed=bytes_accessed,
        ),
    )(x, *flat_params)


def init_params(layer_dim_list, key):
    """Deterministic init mimicking torch.nn.Linear's U(-1/sqrt(fan_in), ...)."""
    params = []
    for i in range(len(layer_dim_list) - 1):
        fan_in, fan_out = layer_dim_list[i], layer_dim_list[i + 1]
        key, kw, kb = jax.random.split(key, 3)
        bound = 1.0 / (fan_in ** 0.5)
        w = jax.random.uniform(kw, (fan_in, fan_out), jnp.float32, -bound, bound)
        b = jax.random.uniform(kb, (1, fan_out), jnp.float32, -bound, bound)
        params.append((w, b))
    return params


def ann_net_reference(x, params):
    n = len(params)
    for i, (w, b) in enumerate(params):
        x = x @ w + b
        if i < n - 1:
            x = jnp.tanh(x)
    return x


if __name__ == "__main__":
    layer_dim_list = [32, 64, 48, 16]   # implied by Linear(in, out) chain
    batch = 8                           # multiple of 8 -> full f32 sublane tile

    key = jax.random.PRNGKey(0)
    key, kx = jax.random.split(key)
    x = jax.random.normal(kx, (batch, layer_dim_list[0]), jnp.float32)

    params = init_params(layer_dim_list, key)

    out = ann_net_forward(x, params)
    out = jax.block_until_ready(out)

    ref = ann_net_reference(x, params)
    assert out.shape == (batch, layer_dim_list[-1])
    assert jnp.allclose(out, ref, atol=1e-4, rtol=1e-4)

    print("KERNEL_OK")
</pallas_src>

<mosaic_0001>
module attributes {stable_mosaic.version = 11 : i64} {
  func.func @_fused_mlp_kernel(%arg0: memref<8x32xf32, #tpu.memory_space<vmem>>, %arg1: memref<32x64xf32, #tpu.memory_space<vmem>>, %arg2: memref<1x64xf32, #tpu.memory_space<vmem>>, %arg3: memref<64x48xf32, #tpu.memory_space<vmem>>, %arg4: memref<1x48xf32, #tpu.memory_space<vmem>>, %arg5: memref<48x16xf32, #tpu.memory_space<vmem>>, %arg6: memref<1x16xf32, #tpu.memory_space<vmem>>, %arg7: memref<8x16xf32, #tpu.memory_space<vmem>>) attributes {dimension_semantics = [], scalar_prefetch = 0 : i64, scratch_operands = 0 : i64, tpu.core_type = #tpu.core_type<tc>} {
    %c0 = arith.constant 0 : index
    %c0_0 = arith.constant 0 : index
    %0 = vector.load %arg0[%c0, %c0_0] : memref<8x32xf32, #tpu.memory_space<vmem>>, vector<8x32xf32>
    %c0_1 = arith.constant 0 : index
    %c0_2 = arith.constant 0 : index
    %1 = vector.load %arg1[%c0_1, %c0_2] : memref<32x64xf32, #tpu.memory_space<vmem>>, vector<32x64xf32>
    %cst = arith.constant dense<0.000000e+00> : vector<8x64xf32>
    %2 = tpu.matmul %0, %1, %cst {dimension_numbers = #tpu.dot_dimension_numbers<[1], [0], [0], [1], [0, 0, 1, 1], [], []>} : vector<8x32xf32>, vector<32x64xf32>, vector<8x64xf32> -> vector<8x64xf32>
    %c0_3 = arith.constant 0 : index
    %c0_4 = arith.constant 0 : index
    %3 = vector.load %arg2[%c0_3, %c0_4] : memref<1x64xf32, #tpu.memory_space<vmem>>, vector<1x64xf32>
    %4 = vector.broadcast %3 : vector<1x64xf32> to vector<8x64xf32>
    %5 = arith.addf %2, %4 : vector<8x64xf32>
    %6 = math.tanh %5 : vector<8x64xf32>
    %c0_5 = arith.constant 0 : index
    %c0_6 = arith.constant 0 : index
    %7 = vector.load %arg3[%c0_5, %c0_6] : memref<64x48xf32, #tpu.memory_space<vmem>>, vector<64x48xf32>
    %cst_7 = arith.constant dense<0.000000e+00> : vector<8x48xf32>
    %8 = tpu.matmul %6, %7, %cst_7 {dimension_numbers = #tpu.dot_dimension_numbers<[1], [0], [0], [1], [0, 0, 1, 1], [], []>} : vector<8x64xf32>, vector<64x48xf32>, vector<8x48xf32> -> vector<8x48xf32>
    %c0_8 = arith.constant 0 : index
    %c0_9 = arith.constant 0 : index
    %9 = vector.load %arg4[%c0_8, %c0_9] : memref<1x48xf32, #tpu.memory_space<vmem>>, vector<1x48xf32>
    %10 = vector.broadcast %9 : vector<1x48xf32> to vector<8x48xf32>
    %11 = arith.addf %8, %10 : vector<8x48xf32>
    %12 = math.tanh %11 : vector<8x48xf32>
    %c0_10 = arith.constant 0 : index
    %c0_11 = arith.constant 0 : index
    %13 = vector.load %arg5[%c0_10, %c0_11] : memref<48x16xf32, #tpu.memory_space<vmem>>, vector<48x16xf32>
    %cst_12 = arith.constant dense<0.000000e+00> : vector<8x16xf32>
    %14 = tpu.matmul %12, %13, %cst_12 {dimension_numbers = #tpu.dot_dimension_numbers<[1], [0], [0], [1], [0, 0, 1, 1], [], []>} : vector<8x48xf32>, vector<48x16xf32>, vector<8x16xf32> -> vector<8x16xf32>
    %c0_13 = arith.constant 0 : index
    %c0_14 = arith.constant 0 : index
    %15 = vector.load %arg6[%c0_13, %c0_14] : memref<1x16xf32, #tpu.memory_space<vmem>>, vector<1x16xf32>
    %16 = vector.broadcast %15 : vector<1x16xf32> to vector<8x16xf32>
    %17 = arith.addf %14, %16 : vector<8x16xf32>
    %c0_15 = arith.constant 0 : index
    %c0_16 = arith.constant 0 : index
    %18 = vector.load %arg7[%c0_15, %c0_16] : memref<8x16xf32, #tpu.memory_space<vmem>>, vector<8x16xf32>
    tpu.vector_store %arg7[%c0_15, %c0_16], %17 {strides = array<i32>} : memref<8x16xf32, #tpu.memory_space<vmem>>, vector<8x16xf32>,
    return
  }
}

</mosaic_0001>

<bundles_post_ra>
// kernel: tpu_custom_call.1
= control target key start
LH: loop header
LB: loop body
LE: loop exit
PB: predicated region body
PF: predicated region fallthrough
CT: control target
= control target key end

     0   :  { %v408_v1 = vmov 0.0   ;;  %vm409_vm0 = vmmov 0   ;;  %s544_s0 = inlined_call_operand.vmem [shape: f32[8,32], index: 0, kind: input, shape index: {}]   ;;  %s545_s1 = inlined_call_operand.vmem [shape: f32[32,64], index: 1, kind: input, shape index: {}]   ;;  %s546_s2 = inlined_call_operand.vmem [shape: f32[1,64], index: 2, kind: input, shape index: {}]   ;;  %s547_s3 = inlined_call_operand.vmem [shape: f32[64,48], index: 3, kind: input, shape index: {}]   ;;  %s548_s4 = inlined_call_operand.vmem [shape: f32[1,48], index: 4, kind: input, shape index: {}]   ;;  %s549_s5 = inlined_call_operand.vmem [shape: f32[48,16], index: 5, kind: input, shape index: {}]   ;;  %s550_s6 = inlined_call_operand.vmem [shape: f32[1,16], index: 6, kind: input, shape index: {}]   ;;  %s551_s7 = inlined_call_operand.hbm [shape: f32[8,16], index: 7, kind: output, shape index: {}]  }
   0x1   :  { %v31_v0 = vld [vmem:[%s545_s1 + $0x18] sm:$0xff]  ;;  %334 = vmatprep.subr.mxu0 %v408_v1  ;;  %v30_v2 = vld [vmem:[%s545_s1 + $0x10] sm:$0xff]  ;;  %342 = vmatprep.mubr.msk.f32.mxu0 %vm409_vm0, %v408_v1 }
   0x2   :  { %335 = vmatpush3.msra.mxu0 %v31_v0  ;;  %345 = vmatprep.subr.mxu1 %v408_v1 }
   0x3   :  { %12 = vsyncpa [#allocation3], 0  ;;  %336 = vmatprep.subr.mxu0 %v408_v1  ;;  %v29_v3 = vld [vmem:[%s545_s1 + $0x8] sm:$0xff]  ;;  %361 = vmatprep.mubr.msk.f32.mxu1 %vm409_vm0, %v408_v1  ;;  %v28_v4 = vld [vmem:[%s545_s1] sm:$0xff]  ;;  %vm39_vm1 = vcmask 261120   ;;  %vm129_vm2 = vcmask 523264  }
   0x4   :  { %337 = vmatpush3.msra.mxu0 %v30_v2  ;;  %v27_v5 = vld [vmem:[%s544_s0] sm:$0xff]  ;;  %v121_v6 = vld [vmem:[%s547_s3 + $0x38] sm:$0xff]  ;;  %v120_v7 = vld [vmem:[%s547_s3 + $0x30] sm:$0xff]  ;;  %vm217_vm3 = vcmask 392192   ;;  %vm291_vm4 = vcmask 130048  }
   0x5   :  { %338 = vmatprep.subr.mxu0 %v408_v1  ;;  %346 = vmatpush3.msra.mxu1 %v121_v6  ;;  %v119_v8 = vld [vmem:[%s547_s3 + $0x28] sm:$0xff]  ;;  %v118_v9 = vld [vmem:[%s547_s3 + $0x20] sm:$0xff]  ;;  %v117_v10 = vld [vmem:[%s547_s3 + $0x18] sm:$0xff] }
   0x6   :  { %339 = vmatpush3.msra.mxu0 %v29_v3  ;;  %347 = vmatprep.subr.mxu1 %v408_v1  ;;  %v116_v11 = vld [vmem:[%s547_s3 + $0x10] sm:$0xff]  ;;  %v115_v12 = vld [vmem:[%s547_s3 + $0x8] sm:$0xff]  ;;  %v114_v13 = vld [vmem:[%s547_s3] sm:$0xff] }
   0x7   :  { %340 = vmatprep.subr.mxu0 %v408_v1  ;;  %348 = vmatpush3.msra.mxu1 %v120_v7  ;;  %v307_v14 = vld [vmem:[%s546_s2] ss:$0 sm:$0xff]  ;;  %v209_v19 = vld [vmem:[%s549_s5 + $0x28] sm:$0xff]  ;;  %v207_v21 = vld [vmem:[%s549_s5 + $0x18] sm:$0xff] }
   0x8   :  { %341 = vmatpush3.msra.mxu0 %v28_v4  ;;  %349 = vmatprep.subr.mxu1 %v408_v1  ;;  %v208_v20 = vld [vmem:[%s549_s5 + $0x20] sm:$0xff]  ;;  %v206_v22 = vld [vmem:[%s549_s5 + $0x10] sm:$0xff]  ;;  %v205_v23 = vld [vmem:[%s549_s5 + $0x8] sm:$0xff] }
   0x9   :  { %343 = vmatmul.mubr.msk.f32.vlgmr.msra.gmra.mxu0 %vm39_vm1, %v27_v5  ;;  %364 = vmatprep.subr.mxu0 %v408_v1  ;;  %v204_v24 = vld [vmem:[%s549_s5] sm:$0xff]  ;;  %s410_s5 = smov [#allocation2]  }
   0xa   :  { %376 = vmatprep.mubr.msk.f32.mxu0 %vm409_vm0, %v408_v1  ;;  %350 = vmatpush3.msra.mxu1 %v119_v8  ;;  %v309_v25 = vld [vmem:[%s548_s4] ss:$0 sm:$0xff]  ;;  %s299_s16 = sshll.u32 %s410_s5, 4  ;;  %s300_s16 = int_to_ptr.vmem [resolvable:$true] %s299_s16 }
   0xb   :  { %351 = vmatprep.subr.mxu1 %v408_v1  ;;  %365 = vmatpush3.msra.mxu0 %v209_v19  ;;  %v311_v30 = vld [vmem:[%s550_s6] ss:$0 sm:$0xff]  ;;  %s386_s4 = scalar_lea.vmem %s300_s16, 128  ;;  %p391_p1 = scmp.lt.s32.totalorder %s300_s16, %s300_s16 }
   0xc   :  { %352 = vmatpush3.msra.mxu1 %v118_v9  ;;  %366 = vmatprep.subr.mxu0 %v408_v1  ;;  %p387_p0 = scmp.ne.s32.totalorder %s300_s16, %s386_s4  ;;  %p392_p2 = scmp.lt.s32.totalorder %s386_s4, %s386_s4 }
   0xd   :  { %353 = vmatprep.subr.mxu1 %v408_v1  ;;  %367 = vmatpush3.msra.mxu0 %v208_v20 }
   0xe   :  { %354 = vmatpush3.msra.mxu1 %v117_v10  ;;  %368 = vmatprep.subr.mxu0 %v408_v1  ;;  %p393_p3 = por %p392_p2, %p391_p1 }
   0xf   :  { %355 = vmatprep.subr.mxu1 %v408_v1  ;;  %369 = vmatpush3.msra.mxu0 %v207_v21 }
  0x10   :  { %356 = vmatpush3.msra.mxu1 %v116_v11  ;;  %370 = vmatprep.subr.mxu0 %v408_v1  ;;  %p394_p4 = pnand %p393_p3, %p387_p0 }
  0x11   :  { %357 = vmatprep.subr.mxu1 %v408_v1  ;;  %371 = vmatpush3.msra.mxu0 %v206_v22 }
  0x12   :  { %358 = vmatpush3.msra.mxu1 %v115_v12  ;;  %372 = vmatprep.subr.mxu0 %v408_v1 }
  0x13   :  { %359 = vmatprep.subr.mxu1 %v408_v1  ;;  %373 = vmatpush3.msra.mxu0 %v205_v23 }
  0x14   :  { %360 = vmatpush3.msra.mxu1 %v114_v13  ;;  %374 = vmatprep.subr.mxu0 %v408_v1 }
  0x15   :  { %375 = vmatpush3.msra.mxu0 %v204_v24 }
  0xc9   :  { %v109_v15 = vpop.f32.mrf.mxu0 }
  0xca   :  { %v110_v16 = vadd.f32 %v307_v14, %v109_v15 }
  0xcb   :  { %v344_v17 = vpop.f32.mrf.mxu0 }
  0xcc   :  { %382 = vtanh.f32 %v110_v16 }
  0xd9   :  { %v383_v18 = vpop.eup %382 }
  0xda   :  { %362 = vmatmul.mubr.msk.f32.vlgmr.msra.gmra.mxu1 %vm129_vm2, %v383_v18 }
 0x19a   :  { %v199_v26 = vpop.f32.mrf.mxu1 }
 0x19b   :  { %v200_v27 = vadd.f32 %v309_v25, %v199_v26 }
 0x19c   :  { %v363_v28 = vpop.f32.mrf.mxu1 }
 0x19d   :  { %384 = vtanh.f32 %v200_v27 }
 0x1aa   :  { %v385_v29 = vpop.eup %384 }
 0x1ab   :  { %377 = vmatmul.mubr.msk.f32.vlgmr.msra.gmra.mxu0 %vm217_vm3, %v385_v29 }
 0x26b   :  { %v287_v31 = vpop.f32.mrf.mxu0 }
 0x26c   :  { %v288_v32 = vadd.f32 %v311_v30, %v287_v31 }
 0x26d   :  { %v378_v33 = vpop.f32.mrf.mxu0 }
 0x26e   :  { %292 = vst.msk [vmem:[#allocation2] sm:$0xff] %vm291_vm4, %v288_v32 }
 0x26f   :  { %397 = shalt.err (!%p394_p4)
}
 0x270   :  { %302 = dma.vmem_to_hbm [thread:$0]  %s300_s16, 128, %s551_s7, [#allocation3]  }
 0x271   :  { %406 = dma.done.wait [#allocation3], 128  }
 0x272   :  { %407 = vsyncadd [#allocation3], 4294967168 }
 0x273   :  { %306 = vsyncpa [#allocation3], 1 }

</bundles_post_ra>
